<compile_context>
chip_gen: v7x
topology: tpu7x:2x2x1
jax: 0.10.0
libtpu: 0.0.40
codegen_flags: <defaults>
</compile_context>

<pallas_src>
from functools import partial

import numpy as np
import jax
import jax.numpy as jnp
from jax.experimental import pallas as pl
from jax.experimental.pallas import tpu as pltpu

EPS = 1e-5
VMEM_LIMIT = 40 * 1024 * 1024       # fits v7x (64 MiB/TC) with headroom; ok on v5e/v6e
ACT_DTYPE = jnp.bfloat16            # inter-kernel activation dtype (MXU-native)


# ------------------------------ tiling helpers --------------------------------

def _round_up(x, m):
    return (x + m - 1) // m * m


def _pick_row_tile(M, target=256):
    """Row (sublane) tile: multiple of 8, <= target.  The caller pads M up to a
    multiple of this tile (padding a few rows is far cheaper than sliver tiles)."""
    return min(target, _round_up(max(M, 1), 8))


def _pick_tile(dim, target, align=128):
    """Lane / contraction tile.  Full extent unless `dim` is a large aligned
    multiple with a big divisor; never collapses to a sliver."""
    if dim <= target or dim % align != 0:
        return dim
    t = (target // align) * align
    while t >= max(align, target // 4):
        if dim % t == 0:
            return t
        t -= align
    return dim                       # fall back to the full extent, not a sliver


def _pick_batch_tile(B, cap=8):
    """Batch rows per attention/score grid step; keeps >= 2 grid steps when B >= 2
    so both v7x TensorCores get work."""
    if B <= 1:
        return 1
    best = 1
    for bt in range(1, min(B // 2, cap) + 1):
        if B % bt == 0:
            best = bt
    return best


# ----------------------------- tiled linear -----------------------------------

def _linear_kernel(x_ref, w_ref, b_ref, o_ref, acc_ref, *, activation):
    @pl.when(pl.program_id(2) == 0)
    def _():
        acc_ref[...] = jnp.zeros_like(acc_ref)

    acc_ref[...] += jnp.dot(x_ref[...].astype(jnp.bfloat16),
                            w_ref[...].astype(jnp.bfloat16),
                            preferred_element_type=jnp.float32)

    @pl.when(pl.program_id(2) == pl.num_programs(2) - 1)
    def _():
        acc = acc_ref[...] + b_ref[...].astype(jnp.float32)
        if activation == "relu":
            acc = jnp.maximum(acc, 0.0)
        o_ref[...] = acc.astype(o_ref.dtype)


def linear(x, w, b, activation=None, tm=256, tn=512, tk=512):
    """x: (..., K) @ w: (K, N) + b -> (..., N).  bf16 MXU operands, f32 accumulator."""
    orig_shape = x.shape
    K = orig_shape[-1]
    M = int(np.prod(orig_shape[:-1]))
    N = w.shape[1]
    x2 = x.reshape(M, K)

    tm = _pick_row_tile(M, tm)
    Mp = _round_up(M, tm)
    if Mp != M:
        x2 = jnp.pad(x2, ((0, Mp - M), (0, 0)))
    tn = _pick_tile(N, tn)
    tk = _pick_tile(K, tk)
    nm, nn, nk = Mp // tm, N // tn, K // tk

    w_spec = pl.BlockSpec((tk, tn), lambda i, j, k: (k, j))
    if nk > 1:
        # Small-M inference linears are weight-DMA bound: triple-buffer the weights.
        w_spec = pl.BlockSpec((tk, tn), lambda i, j, k: (k, j),
                              pipeline_mode=pl.Buffered(3))

    out = pl.pallas_call(
        partial(_linear_kernel, activation=activation),
        out_shape=jax.ShapeDtypeStruct((Mp, N), ACT_DTYPE),
        grid=(nm, nn, nk),
        in_specs=[
            pl.BlockSpec((tm, tk), lambda i, j, k: (i, k)),
            w_spec,
            pl.BlockSpec((1, tn), lambda i, j, k: (0, j)),
        ],
        out_specs=pl.BlockSpec((tm, tn), lambda i, j, k: (i, j)),
        scratch_shapes=[pltpu.VMEM((tm, tn), jnp.float32)],
        compiler_params=pltpu.CompilerParams(
            dimension_semantics=("parallel", "parallel", "arbitrary"),
            vmem_limit_bytes=VMEM_LIMIT),
    )(x2, w, b.reshape(1, N))
    return out[:M].reshape(*orig_shape[:-1], N)


# --------------------------- layernorm (standalone) ----------------------------

def _ln_math(x, g, b):
    mean = jnp.mean(x, axis=-1, keepdims=True)
    var = jnp.mean((x - mean) ** 2, axis=-1, keepdims=True)
    return (x - mean) * jax.lax.rsqrt(var + EPS) * g + b


def _layernorm_kernel(x_ref, g_ref, b_ref, o_ref):
    x = x_ref[...].astype(jnp.float32)
    o_ref[...] = _ln_math(x, g_ref[...].astype(jnp.float32),
                          b_ref[...].astype(jnp.float32)).astype(o_ref.dtype)


def layernorm(x, g, b, tm=256):
    shape = x.shape
    H = shape[-1]
    M = int(np.prod(shape[:-1]))
    tm = _pick_row_tile(M, tm)
    Mp = _round_up(M, tm)
    x2 = x.reshape(M, H)
    if Mp != M:
        x2 = jnp.pad(x2, ((0, Mp - M), (0, 0)))
    out = pl.pallas_call(
        _layernorm_kernel,
        out_shape=jax.ShapeDtypeStruct((Mp, H), ACT_DTYPE),
        grid=(Mp // tm,),
        in_specs=[pl.BlockSpec((tm, H), lambda i: (i, 0)),
                  pl.BlockSpec((1, H), lambda i: (0, 0)),
                  pl.BlockSpec((1, H), lambda i: (0, 0))],
        out_specs=pl.BlockSpec((tm, H), lambda i: (i, 0)),
        compiler_params=pltpu.CompilerParams(
            dimension_semantics=("parallel",), vmem_limit_bytes=VMEM_LIMIT),
    )(x2, g.reshape(1, H), b.reshape(1, H))
    return out[:M].reshape(shape)


# -------------------- fused projection + residual + layernorm ------------------

def _proj_res_ln_kernel(x_ref, w_ref, b_ref, r_ref, g_ref, bln_ref, o_ref):
    y = jnp.dot(x_ref[...].astype(jnp.bfloat16), w_ref[...].astype(jnp.bfloat16),
                preferred_element_type=jnp.float32)
    y = y + b_ref[...].astype(jnp.float32) + r_ref[...].astype(jnp.float32)
    o_ref[...] = _ln_math(y, g_ref[...].astype(jnp.float32),
                          bln_ref[...].astype(jnp.float32)).astype(o_ref.dtype)


def proj_residual_ln(x, w, b, residual, g, bln, tm=256):
    """LayerNorm(x @ w + b + residual) in one pallas_call (full K / N per step)."""
    shape = residual.shape
    K = x.shape[-1]
    N = w.shape[1]
    M = int(np.prod(shape[:-1]))
    x2 = x.reshape(M, K)
    r2 = residual.reshape(M, N)
    tm = _pick_row_tile(M, tm)
    Mp = _round_up(M, tm)
    if Mp != M:
        x2 = jnp.pad(x2, ((0, Mp - M), (0, 0)))
        r2 = jnp.pad(r2, ((0, Mp - M), (0, 0)))
    out = pl.pallas_call(
        _proj_res_ln_kernel,
        out_shape=jax.ShapeDtypeStruct((Mp, N), ACT_DTYPE),
        grid=(Mp // tm,),
        in_specs=[pl.BlockSpec((tm, K), lambda i: (i, 0)),
                  pl.BlockSpec((K, N), lambda i: (0, 0)),
                  pl.BlockSpec((1, N), lambda i: (0, 0)),
                  pl.BlockSpec((tm, N), lambda i: (i, 0)),
                  pl.BlockSpec((1, N), lambda i: (0, 0)),
                  pl.BlockSpec((1, N), lambda i: (0, 0))],
        out_specs=pl.BlockSpec((tm, N), lambda i: (i, 0)),
        compiler_params=pltpu.CompilerParams(
            dimension_semantics=("parallel",), vmem_limit_bytes=VMEM_LIMIT),
    )(x2, w, b.reshape(1, N), r2, g.reshape(1, N), bln.reshape(1, N))
    return out[:M].reshape(shape)


# --------------------- fused FFN (w1/relu/w2) + residual + LN -------------------

def _ffn_res_ln_kernel(x_ref, w1_ref, b1_ref, w2_ref, b2_ref, g_ref, bln_ref, o_ref):
    x = x_ref[...]
    h = jnp.dot(x.astype(jnp.bfloat16), w1_ref[...].astype(jnp.bfloat16),
                preferred_element_type=jnp.float32)
    h = jnp.maximum(h + b1_ref[...].astype(jnp.float32), 0.0)
    y = jnp.dot(h.astype(jnp.bfloat16), w2_ref[...].astype(jnp.bfloat16),
                preferred_element_type=jnp.float32)
    y = y + b2_ref[...].astype(jnp.float32) + x.astype(jnp.float32)   # residual = FFN input
    o_ref[...] = _ln_math(y, g_ref[...].astype(jnp.float32),
                          bln_ref[...].astype(jnp.float32)).astype(o_ref.dtype)


def ffn_residual_ln(x, w1, b1, w2, b2, g, bln, tm=256):
    """LayerNorm(relu(x@w1+b1)@w2 + b2 + x) fused; the (M, 4H) intermediate never
    touches HBM."""
    shape = x.shape
    H = shape[-1]
    FF = w1.shape[1]
    M = int(np.prod(shape[:-1]))
    tm = _pick_row_tile(M, tm)

    # Rough per-step VMEM estimate (weights + intermediate + activations, x2 buffers).
    fused_bytes = 2 * ((H * FF + FF * H) * 2 + tm * FF * 4 + 6 * tm * H * 4)
    if fused_bytes > VMEM_LIMIT:
        # TODO(synk): tile the FF axis inside the fused kernel for very large hidden dims.
        h = linear(x, w1, b1, activation="relu")
        return proj_residual_ln(h, w2, b2, x, g, bln, tm=tm)

    Mp = _round_up(M, tm)
    x2 = x.reshape(M, H)
    if Mp != M:
        x2 = jnp.pad(x2, ((0, Mp - M), (0, 0)))
    out = pl.pallas_call(
        _ffn_res_ln_kernel,
        out_shape=jax.ShapeDtypeStruct((Mp, H), ACT_DTYPE),
        grid=(Mp // tm,),
        in_specs=[pl.BlockSpec((tm, H), lambda i: (i, 0)),
                  pl.BlockSpec((H, FF), lambda i: (0, 0)),
                  pl.BlockSpec((1, FF), lambda i: (0, 0)),
                  pl.BlockSpec((FF, H), lambda i: (0, 0)),
                  pl.BlockSpec((1, H), lambda i: (0, 0)),
                  pl.BlockSpec((1, H), lambda i: (0, 0)),
                  pl.BlockSpec((1, H), lambda i: (0, 0))],
        out_specs=pl.BlockSpec((tm, H), lambda i: (i, 0)),
        compiler_params=pltpu.CompilerParams(
            dimension_semantics=("parallel",), vmem_limit_bytes=VMEM_LIMIT),
    )(x2, w1, b1.reshape(1, FF), w2, b2.reshape(1, H),
      g.reshape(1, H), bln.reshape(1, H))
    return out[:M].reshape(shape)


# --------------------------------- attention ------------------------------------

def _attn_core(q, k, v, bias, num_heads, scale, o_ref):
    """q: (Bt,Sq,H), k/v: (Bt,Sk,H), bias: (Bt,1,Sk) f32.  Heads are looped
    statically; each head's result is stored directly into its output slice
    (no concat, no extra live registers).
    TODO(synk): head-batched dot_general is preferable once dh >= 128 (MXU width)."""
    H = q.shape[-1]
    dh = H // num_heads
    for h in range(num_heads):
        lo = h * dh
        qh = q[:, :, lo:lo + dh].astype(jnp.bfloat16)
        kh = k[:, :, lo:lo + dh].astype(jnp.bfloat16)
        vh = v[:, :, lo:lo + dh].astype(jnp.bfloat16)
        s = jnp.einsum('bqd,bkd->bqk', qh, kh,
                       preferred_element_type=jnp.float32) * scale
        s = s + bias
        m = jnp.max(s, axis=-1, keepdims=True)
        p = jnp.exp(s - m)
        p = p / jnp.sum(p, axis=-1, keepdims=True)
        oh = jnp.einsum('bqk,bkd->bqd', p.astype(jnp.bfloat16), vh,
                        preferred_element_type=jnp.float32)
        o_ref[:, :, lo:lo + dh] = oh.astype(o_ref.dtype)
    # TODO(synk): for long profiles (S >> 512) switch to a flash-style online
    # softmax over key tiles instead of the dense (Sq, Sk) score matrix.


def _self_attn_kernel(qkv_ref, pad_ref, o_ref, *, num_heads, scale):
    x = qkv_ref[...]                                          # (Bt, S, 3H) bf16
    H = x.shape[-1] // 3
    q, k, v = x[:, :, :H], x[:, :, H:2 * H], x[:, :, 2 * H:]
    bias = jnp.where(pad_ref[...] > 0.0, jnp.float32(-1e9), jnp.float32(0.0))
    _attn_core(q, k, v, bias, num_heads, scale, o_ref)


def _cross_attn_kernel(q_ref, kv_ref, pad_ref, o_ref, *, num_heads, scale):
    q = q_ref[...]                                            # (Bt, Sq, H)
    kv = kv_ref[...]                                          # (Bt, Sk, 2H)
    H = q.shape[-1]
    k, v = kv[:, :, :H], kv[:, :, H:]
    bias = jnp.where(pad_ref[...] > 0.0, jnp.float32(-1e9), jnp.float32(0.0))
    _attn_core(q, k, v, bias, num_heads, scale, o_ref)


def self_attention(qkv, pad, num_heads):
    """qkv: (B, S, 3H) fused projection; pad: (B, 1, S) float (1.0 = padding)."""
    B, S, H3 = qkv.shape
    H = H3 // 3
    scale = 1.0 / float(np.sqrt(H // num_heads))
    Bt = _pick_batch_tile(B)
    return pl.pallas_call(
        partial(_self_attn_kernel, num_heads=num_heads, scale=scale),
        out_shape=jax.ShapeDtypeStruct((B, S, H), ACT_DTYPE),
        grid=(B // Bt,),
        in_specs=[pl.BlockSpec((Bt, S, H3), lambda b: (b, 0, 0)),
                  pl.BlockSpec((Bt, 1, S), lambda b: (b, 0, 0))],
        out_specs=pl.BlockSpec((Bt, S, H), lambda b: (b, 0, 0)),
        compiler_params=pltpu.CompilerParams(
            dimension_semantics=("parallel",), vmem_limit_bytes=VMEM_LIMIT),
    )(qkv, pad)


def cross_attention(q, kv, pad, num_heads):
    """q: (B, Sq, H); kv: (B, Sk, 2H) fused K|V; pad: (B, 1, Sk)."""
    B, Sq, H = q.shape
    Sk = kv.shape[1]
    scale = 1.0 / float(np.sqrt(H // num_heads))
    Bt = _pick_batch_tile(B)
    return pl.pallas_call(
        partial(_cross_attn_kernel, num_heads=num_heads, scale=scale),
        out_shape=jax.ShapeDtypeStruct((B, Sq, H), ACT_DTYPE),
        grid=(B // Bt,),
        in_specs=[pl.BlockSpec((Bt, Sq, H), lambda b: (b, 0, 0)),
                  pl.BlockSpec((Bt, Sk, 2 * H), lambda b: (b, 0, 0)),
                  pl.BlockSpec((Bt, 1, Sk), lambda b: (b, 0, 0))],
        out_specs=pl.BlockSpec((Bt, Sq, H), lambda b: (b, 0, 0)),
        compiler_params=pltpu.CompilerParams(
            dimension_semantics=("parallel",), vmem_limit_bytes=VMEM_LIMIT),
    )(q, kv, pad)


# --------------------------------- score head -----------------------------------

def _score_kernel(y_ref, w_ref, b_ref, o_ref):
    y = y_ref[...].astype(jnp.bfloat16)                       # (C, H)
    w = w_ref[...].astype(jnp.bfloat16)                       # (1, H)
    logits = jax.lax.dot_general(w, y, (((1,), (1,)), ((), ())),
                                 preferred_element_type=jnp.float32)   # (1, C) lane-dense
    o_ref[...] = logits + b_ref[...].astype(jnp.float32)


def score_head(y, w, b):
    """y: (B, C, H) @ w: (H, 1) + b -> (B, C), C kept on the lane axis."""
    B, C, H = y.shape
    out = pl.pallas_call(
        _score_kernel,
        out_shape=jax.ShapeDtypeStruct((B, 1, C), jnp.float32),
        grid=(B,),
        in_specs=[pl.BlockSpec((None, C, H), lambda b: (b, 0, 0)),
                  pl.BlockSpec((1, H), lambda b: (0, 0)),
                  pl.BlockSpec((1, 1), lambda b: (0, 0))],
        out_specs=pl.BlockSpec((None, 1, C), lambda b: (b, 0, 0)),
        compiler_params=pltpu.CompilerParams(
            dimension_semantics=("parallel",), vmem_limit_bytes=VMEM_LIMIT),
    )(y, w.reshape(1, H), b.reshape(1, 1))
    return out.reshape(B, C)


# ------------------------------- model wrappers ----------------------------------

def item_encoder(tokens, icontexts, ifeatures_table, p):
    feats = ifeatures_table[tokens]                    # gather: plain-JAX glue
    x = jnp.concatenate([feats.astype(jnp.float32),
                         icontexts.astype(jnp.float32)], axis=-1)
    return linear(x, p["w"], p["b"])


def attn_block(x_q, x_kv, key_pad, p, num_heads, self_attn):
    H = x_q.shape[-1]
    if self_attn:
        qkv = linear(x_q, p["wqkv"], p["bqkv"])                      # (B,S,3H) fused QKV
        attn = self_attention(qkv, key_pad, num_heads)
    else:
        q = linear(x_q, p["wqkv"][:, :H], p["bqkv"][:H])             # (B,Sq,H)
        kv = linear(x_kv, p["wqkv"][:, H:], p["bqkv"][H:])           # (B,Sk,2H) fused K|V
        attn = cross_attention(q, kv, key_pad, num_heads)
    # fused: out-projection + bias + residual + LayerNorm1
    x = proj_residual_ln(attn, p["wo"], p["bo"], x_q, p["ln1_g"], p["ln1_b"])
    # fused: FFN (w1/relu/w2) + residual + LayerNorm2
    x = ffn_residual_ln(x, p["w1"], p["b1"], p["w2"], p["b2"], p["ln2_g"], p["ln2_b"])
    return x


def carca_forward(params, profile_tokens, profile_icontexts,
                  extract_tokens, extract_icontexts, num_heads):
    B, L = profile_tokens.shape
    # Key padding mask over profile tokens (1.0 = padding), shared across heads,
    # query positions, and both self- and cross-attention; -1e9 bias built in-kernel.
    key_pad = (profile_tokens == 0).astype(jnp.float32).reshape(B, 1, L)

    P = item_encoder(profile_tokens, profile_icontexts, params["ifeatures"], params["enc"])
    E = item_encoder(extract_tokens, extract_icontexts, params["ifeatures"], params["enc"])
    E = layernorm(E, params["item_ln_g"], params["item_ln_b"])

    for lyr in params["transformers"]:
        P = attn_block(P, P, key_pad, lyr, num_heads, self_attn=True)
    P = layernorm(P, params["item_ln_g"], params["item_ln_b"])

    Y = attn_block(E, P, key_pad, params["cross"], num_heads, self_attn=False)
    logits = score_head(Y, params["w_score"], params["b_score"])     # (B, C)
    return logits


# ------------------------------- parameter init ----------------------------------

def _lin_params(key, d_in, d_out):
    # Matmul weights stored in bf16 (MXU-native, half the weight DMA); biases f32.
    # TODO(synk): fp8 weight quantization is an option on v7x if accuracy allows.
    return {"w": (jax.random.normal(key, (d_in, d_out), jnp.float32) * 0.02
                  ).astype(jnp.bfloat16),
            "b": jnp.zeros((d_out,), jnp.float32)}


def _mha_params(key, h):
    k1, k2 = jax.random.split(key, 2)
    return {"wqkv": (jax.random.normal(k1, (h, 3 * h), jnp.float32) * 0.02
                     ).astype(jnp.bfloat16),
            "bqkv": jnp.zeros((3 * h,), jnp.float32),
            "wo": (jax.random.normal(k2, (h, h), jnp.float32) * 0.02
                   ).astype(jnp.bfloat16),
            "bo": jnp.zeros((h,), jnp.float32)}


def _block_params(key, h, ff):
    k1, k2, k3 = jax.random.split(key, 3)
    w1 = _lin_params(k2, h, ff)
    w2 = _lin_params(k3, ff, h)
    p = _mha_params(k1, h)
    p.update({"w1": w1["w"], "b1": w1["b"], "w2": w2["w"], "b2": w2["b"],
              "ln1_g": jnp.ones((h,), jnp.float32), "ln1_b": jnp.zeros((h,), jnp.float32),
              "ln2_g": jnp.ones((h,), jnp.float32), "ln2_b": jnp.zeros((h,), jnp.float32)})
    return p


def init_params(key, num_items, ifeature_dim, icontext_dim, hidden, num_layers):
    keys = jax.random.split(key, 5 + num_layers)
    # item feature table: row 0 is the padding item (zeros), items start at 1.
    ifeatures = jax.random.normal(keys[0], (num_items + 1, ifeature_dim), jnp.float32)
    ifeatures = ifeatures.at[0].set(0.0)
    enc = _lin_params(keys[1], ifeature_dim + icontext_dim, hidden)
    score = _lin_params(keys[2], hidden, 1)
    return {
        "ifeatures": ifeatures,
        "enc": enc,
        "item_ln_g": jnp.ones((hidden,), jnp.float32),
        "item_ln_b": jnp.zeros((hidden,), jnp.float32),
        "transformers": [_block_params(keys[5 + i], hidden, hidden * 4)
                         for i in range(num_layers)],
        "cross": _block_params(keys[3], hidden, hidden * 4),
        "w_score": score["w"], "b_score": score["b"],
    }


# ------------------------------------- main ---------------------------------------

if __name__ == "__main__":
    num_items, ifeature_dim, icontext_dim = 20, 6, 4
    hidden_dim, num_layers, num_heads = 32, 1, 4
    B, L, C = 2, 8, 8

    root = jax.random.PRNGKey(0)
    k_param, k_pt, k_pc, k_et, k_ec = jax.random.split(root, 5)

    params = init_params(k_param, num_items, ifeature_dim, icontext_dim,
                         hidden_dim, num_layers)

    # tokens in [0, num_items]; 0 = padding (exercises the attention mask)
    profile_tokens = jax.random.randint(k_pt, (B, L), 0, num_items + 1)
    extract_tokens = jax.random.randint(k_et, (B, C), 1, num_items + 1)
    profile_icontexts = jax.random.normal(k_pc, (B, L, icontext_dim), jnp.float32)
    extract_icontexts = jax.random.normal(k_ec, (B, C, icontext_dim), jnp.float32)

    logits = carca_forward(params, profile_tokens, profile_icontexts,
                           extract_tokens, extract_icontexts, num_heads)
    logits = jax.block_until_ready(logits)
    assert logits.shape == (B, C) and bool(jnp.all(jnp.isfinite(logits)))
    print("KERNEL_OK")
</pallas_src>

<mosaic_0001>
module attributes {stable_mosaic.version = 11 : i64} {
  func.func @_linear_kernel(%arg0: i32, %arg1: i32, %arg2: i32, %arg3: memref<16x10xf32, #tpu.memory_space<vmem>>, %arg4: memref<10x32xbf16, #tpu.memory_space<vmem>>, %arg5: memref<1x32xf32, #tpu.memory_space<vmem>>, %arg6: memref<16x32xbf16, #tpu.memory_space<vmem>>, %arg7: memref<16x32xf32, #tpu.memory_space<vmem>>) attributes {dimension_semantics = [#tpu.dimension_semantics<parallel>, #tpu.dimension_semantics<parallel>, #tpu.dimension_semantics<arbitrary>], iteration_bounds = array<i64: 1, 1, 1>, scalar_prefetch = 0 : i64, scratch_operands = 1 : i64, tpu.core_type = #tpu.core_type<tc>, window_params = [{transform_indices = @transform_0, window_bounds = array<i64: 16, 10>}, {transform_indices = @transform_1, window_bounds = array<i64: 10, 32>}, {transform_indices = @transform_2, window_bounds = array<i64: 1, 32>}, {transform_indices = @transform_3, window_bounds = array<i64: 16, 32>}]} {
    %c0_i32 = arith.constant 0 : i32
    %0 = arith.cmpi eq, %arg2, %c0_i32 : i32
    %1 = arith.extui %0 : i1 to i32
    %c0_i32_0 = arith.constant 0 : i32
    %2 = arith.cmpi ne, %1, %c0_i32_0 : i32
    scf.if %2 {
      %cst_10 = arith.constant 0.000000e+00 : f32
      %13 = vector.broadcast %cst_10 : f32 to vector<16x32xf32>
      %c0_11 = arith.constant 0 : index
      %c0_12 = arith.constant 0 : index
      %14 = vector.load %arg7[%c0_11, %c0_12] : memref<16x32xf32, #tpu.memory_space<vmem>>, vector<16x32xf32>
      tpu.vector_store %arg7[%c0_11, %c0_12], %13 {strides = array<i32>} : memref<16x32xf32, #tpu.memory_space<vmem>>, vector<16x32xf32>,
    } else {
    }
    %c0 = arith.constant 0 : index
    %c0_1 = arith.constant 0 : index
    %3 = vector.load %arg7[%c0, %c0_1] : memref<16x32xf32, #tpu.memory_space<vmem>>, vector<16x32xf32>
    %c0_2 = arith.constant 0 : index
    %c0_3 = arith.constant 0 : index
    %4 = vector.load %arg3[%c0_2, %c0_3] : memref<16x10xf32, #tpu.memory_space<vmem>>, vector<16x10xf32>
    %5 = arith.truncf %4 : vector<16x10xf32> to vector<16x10xbf16>
    %c0_4 = arith.constant 0 : index
    %c0_5 = arith.constant 0 : index
    %6 = vector.load %arg4[%c0_4, %c0_5] : memref<10x32xbf16, #tpu.memory_space<vmem>>, vector<10x32xbf16>
    %cst = arith.constant dense<0.000000e+00> : vector<16x32xf32>
    %7 = tpu.matmul %5, %6, %cst {dimension_numbers = #tpu.dot_dimension_numbers<[1], [0], [0], [1], [0, 0, 1, 1], [], []>} : vector<16x10xbf16>, vector<10x32xbf16>, vector<16x32xf32> -> vector<16x32xf32>
    %8 = arith.addf %3, %7 : vector<16x32xf32>
    %c0_6 = arith.constant 0 : index
    %c0_7 = arith.constant 0 : index
    %9 = vector.load %arg7[%c0_6, %c0_7] : memref<16x32xf32, #tpu.memory_space<vmem>>, vector<16x32xf32>
    tpu.vector_store %arg7[%c0_6, %c0_7], %8 {strides = array<i32>} : memref<16x32xf32, #tpu.memory_space<vmem>>, vector<16x32xf32>,
    %c0_i32_8 = arith.constant 0 : i32
    %10 = arith.cmpi eq, %arg2, %c0_i32_8 : i32
    %11 = arith.extui %10 : i1 to i32
    %c0_i32_9 = arith.constant 0 : i32
    %12 = arith.cmpi ne, %11, %c0_i32_9 : i32
    scf.if %12 {
      %c0_10 = arith.constant 0 : index
      %c0_11 = arith.constant 0 : index
      %13 = vector.load %arg7[%c0_10, %c0_11] : memref<16x32xf32, #tpu.memory_space<vmem>>, vector<16x32xf32>
      %c0_12 = arith.constant 0 : index
      %c0_13 = arith.constant 0 : index
      %14 = vector.load %arg5[%c0_12, %c0_13] : memref<1x32xf32, #tpu.memory_space<vmem>>, vector<1x32xf32>
      %15 = vector.broadcast %14 : vector<1x32xf32> to vector<16x32xf32>
      %16 = arith.addf %13, %15 : vector<16x32xf32>
      %17 = arith.truncf %16 : vector<16x32xf32> to vector<16x32xbf16>
      %c0_14 = arith.constant 0 : index
      %c0_15 = arith.constant 0 : index
      %18 = vector.load %arg6[%c0_14, %c0_15] : memref<16x32xbf16, #tpu.memory_space<vmem>>, vector<16x32xbf16>
      tpu.vector_store %arg6[%c0_14, %c0_15], %17 {strides = array<i32>} : memref<16x32xbf16, #tpu.memory_space<vmem>>, vector<16x32xbf16>,
    } else {
    }
    return
  }
  func.func @transform_0(%arg0: i32, %arg1: i32, %arg2: i32) -> (i32, i32) {
    %c0_i32 = arith.constant 0 : i32
    return %arg0, %arg2 : i32, i32
  }
  func.func @transform_1(%arg0: i32, %arg1: i32, %arg2: i32) -> (i32, i32) {
    %c0_i32 = arith.constant 0 : i32
    return %arg2, %arg1 : i32, i32
  }
  func.func @transform_2(%arg0: i32, %arg1: i32, %arg2: i32) -> (i32, i32) {
    %c0_i32 = arith.constant 0 : i32
    %c0_i32_0 = arith.constant 0 : i32
    return %c0_i32, %arg1 : i32, i32
  }
  func.func @transform_3(%arg0: i32, %arg1: i32, %arg2: i32) -> (i32, i32) {
    %c0_i32 = arith.constant 0 : i32
    return %arg0, %arg1 : i32, i32
  }
}

</mosaic_0001>

<bundles_post_ra>
// kernel: tpu_custom_call.1
= control target key start
LH: loop header
LB: loop body
LE: loop exit
PB: predicated region body
PF: predicated region fallthrough
CT: control target
= control target key end

     0   :  { %8 = vsyncpa [#allocation4], 0  ;;  %s335_s0 = inlined_call_operand.hbm [shape: f32[16,10], index: 0, kind: input, shape index: {}]   ;;  %s336_s1 = inlined_call_operand.hbm [shape: bf16[10,32], index: 1, kind: input, shape index: {}]   ;;  %s337_s2 = inlined_call_operand.vmem [shape: f32[1,32], index: 2, kind: input, shape index: {}]   ;;  %s338_s3 = inlined_call_operand.hbm [shape: bf16[16,32], index: 3, kind: output, shape index: {}]  }
   0x1   :  { %9 = vsyncpa [#allocation7], 0 }
   0x2   :  { %10 = vsyncpa [#allocation5], 0  ;;  %s257_s12 = smov [#allocation3]   ;;  %s185_s16 = scalar_lea.hbm %s335_s0, 256 }
   0x3   :  { %s16_s13 = sshll.u32 %s257_s12, 4  ;;  %p186_p0 = scmp.ne.s32.totalorder %s335_s0, %s185_s16  ;;  %s17_s13 = int_to_ptr.vmem [resolvable:$true] %s16_s13 }
   0x4   :  { %p189_p1 = scmp.lt.u32.totalorder %s185_s16, %s335_s0 }
   0x6   :  { %p191_p2 = pnand %p189_p1, %p186_p0 }
   0x8   :  { %194 = shalt.err (!%p191_p2)
}
   0x9   :  { %s195_s21 = scalar_lea.vmem %s17_s13, 256  ;;  %p200_p4 = scmp.lt.s32.totalorder %s17_s13, %s17_s13 }
   0xa   :  { %p196_p3 = scmp.ne.s32.totalorder %s17_s13, %s195_s21  ;;  %p201_p5 = scmp.lt.s32.totalorder %s195_s21, %s195_s21 }
   0xc   :  { %p202_p6 = por %p201_p5, %p200_p4 }
   0xe   :  { %p203_p7 = pnand %p202_p6, %p196_p3 }
  0x10   :  { %206 = shalt.err (!%p203_p7)
}
  0x11   :  { %s258_s22 = smov 128   ;;  %s259_s23 = smov 8  }
  0x12   :  { %22 = dma.hbm_to_vmem [thread:$0]  %s335_s0, 256, %s17_s13, [#allocation4], %s258_s22, %s258_s22, %s259_s23  }
  0x13   :  { %s260_s26 = smov [#allocation6]   ;;  %s207_s30 = scalar_lea.hbm %s336_s1, 128 }
  0x14   :  { %s28_s27 = sshll.u32 %s260_s26, 4  ;;  %p208_p8 = scmp.ne.s32.totalorder %s336_s1, %s207_s30  ;;  %s29_s27 = int_to_ptr.vmem [resolvable:$true] %s28_s27 }
  0x15   :  { %p211_p9 = scmp.lt.u32.totalorder %s207_s30, %s336_s1 }
  0x17   :  { %p213_p10 = pnand %p211_p9, %p208_p8 }
  0x19   :  { %216 = shalt.err (!%p213_p10)
}
  0x1a   :  { %s217_s8 = scalar_lea.vmem %s29_s27, 128  ;;  %p222_p12 = scmp.lt.s32.totalorder %s29_s27, %s29_s27 }
  0x1b   :  { %p218_p11 = scmp.ne.s32.totalorder %s29_s27, %s217_s8  ;;  %p223_p13 = scmp.lt.s32.totalorder %s217_s8, %s217_s8 }
  0x1d   :  { %p224_p0 = por %p223_p13, %p222_p12 }
  0x1f   :  { %p225_p1 = pnand %p224_p0, %p218_p11 }
  0x21   :  { %228 = shalt.err (!%p225_p1)
}
  0x22   :  { %s261_s0 = smov 64   ;;  %s262_s9 = smov 4  }
  0x23   :  { %34 = dma.hbm_to_vmem [thread:$0]  %s336_s1, 128, %s29_s27, [#allocation7], %s261_s0, %s261_s0, %s262_s9  }
  0x24   :  { %251 = dma.done.wait [#allocation4], 256  }
  0x25   :  { %252 = vsyncadd [#allocation4], 4294967040 }
  0x26   :  { %253 = dma.done.wait [#allocation7], 128  }
  0x27   :  { %254 = vsyncadd [#allocation7], 4294967168  ;;  %vm48_vm0 = vcmask 261120   ;;  %v263_v0 = vmov 0.0   ;;  %vm264_vm1 = vmmov 0   ;;  %vm67_vm2 = vcmask 1044480  }
  0x28   :  { %49 = vst.msk [vmem:[#allocation2] sm:$0xff] %vm48_vm0, %v263_v0  ;;  %50 = vst.msk [vmem:[#allocation2 + $0x8] sm:$0xff] %vm48_vm0, %v263_v0  ;;  %169 = vmatprep.subr.bf16.mxu0 %v263_v0  ;;  %171 = vmatprep.mubr.msk.bf16.mxu0 %vm264_vm1, %v263_v0  ;;  %v184_v1 = vld [vmem:[#allocation6] sm:$0x1f]   ;;  %v53_v2 = vld [vmem:[#allocation3] sm:$0xff]  ;;  %vm63_vm3 = vcmask 80896  }
  0x29   :  { %v54_v3 = vld [vmem:[#allocation3 + $0x8] sm:$0xff]  ;;  %v69_v4 = vsel %vm67_vm2, %v184_v1, 0  ;;  %v162_v14 = vld [vmem:[%s337_s2] ss:$0 sm:$0xff]  ;;  %vm139_vm4 = vcmask 257024   ;;  %s265_s13 = smov [#allocation8]  }
  0x2a   :  { %v55_v5 = vpack.c.bf16 %v54_v3, %v53_v2  ;;  %170 = vmatpush3.bf16.msra.mxu0 %v69_v4  ;;  %s147_s14 = sshll.u32 %s265_s13, 4  ;;  %s148_s14 = int_to_ptr.vmem [resolvable:$true] %s147_s14 }
  0x2b   :  { %s229_s15 = scalar_lea.vmem %s148_s14, 128  ;;  %p234_p3 = scmp.lt.s32.totalorder %s148_s14, %s148_s14 }
  0x2c   :  { %p230_p2 = scmp.ne.s32.totalorder %s148_s14, %s229_s15  ;;  %p235_p4 = scmp.lt.s32.totalorder %s229_s15, %s229_s15 }
  0x2d   :  { %172 = vmatmul.mubr.msk.bf16.vlgmr.msra.gmra.mrb[0].mxu0 %vm63_vm3, %v55_v5 }
  0x2e   :  { %p236_p5 = por %p235_p4, %p234_p3 }
  0x2f   :  { %v51_v6 = vld [vmem:[#allocation2] sm:$0xff]  ;;  %v52_v8 = vld [vmem:[#allocation2 + $0x8] sm:$0xff] }
  0x30   :  { %p237_p6 = pnand %p236_p5, %p230_p2 }
 0x100   :  { %v105_v7 = vpop.f32.mrb[0].mxu0 }
 0x101   :  { %v112_v9 = vadd.f32 %v105_v7, %v51_v6  ;;  %v173_v10 = vpop.f32.mrb[1].mxu0 }
 0x102   :  { %v108_v11 = vpop.f32.mrb[2].mxu0 }
 0x103   :  { %115 = vst.msk [vmem:[#allocation2] sm:$0xff] %vm48_vm0, %v112_v9  ;;  %v113_v12 = vadd.f32 %v108_v11, %v52_v8  ;;  %v174_v13 = vpop.f32.mrb[3].mxu0 }
 0x105   :  { %116 = vst.msk [vmem:[#allocation2 + $0x8] sm:$0xff] %vm48_vm0, %v113_v12 }
 0x10a   :  { %v120_v15 = vld [vmem:[#allocation2] sm:$0xff] }
 0x10b   :  { %v129_v16 = vadd.f32 %v162_v14, %v120_v15 }
 0x10c   :  { %v121_v17 = vld [vmem:[#allocation2 + $0x8] sm:$0xff] }
 0x10d   :  { %v130_v18 = vadd.f32 %v162_v14, %v121_v17  ;;  %v165_v19 = vpack.c.bf16 %v129_v16, %v129_v16 }
 0x10f   :  { %v166_v20 = vpack.c.bf16 %v130_v18, %v130_v18  ;;  %140 = vst.msk [vmem:[#allocation8] sm:$0xf] %vm139_vm4, %v165_v19 }
 0x111   :  { %141 = vst.msk [vmem:[#allocation8 + $0x4] sm:$0xf] %vm139_vm4, %v166_v20 }
 0x112   :  { %240 = shalt.err (!%p237_p6)
}
 0x113   :  { %s241_s17 = scalar_lea.hbm %s338_s3, 128 }
 0x114   :  { %p242_p7 = scmp.ne.s32.totalorder %s338_s3, %s241_s17  ;;  %p245_p8 = scmp.lt.u32.totalorder %s241_s17, %s338_s3 }
 0x116   :  { %p247_p9 = pnand %p245_p8, %p242_p7 }
 0x118   :  { %250 = shalt.err (!%p247_p9)
}
 0x119   :  { %153 = dma.vmem_to_hbm [thread:$0]  %s148_s14, 128, %s338_s3, [#allocation5], %s261_s0, %s261_s0, %s262_s9  }
 0x11a   :  { %255 = dma.done.wait [#allocation5], 128  }
 0x11b   :  { %256 = vsyncadd [#allocation5], 4294967168 }
 0x11c   :  { %157 = vsyncpa [#allocation4], 1 }
 0x11d   :  { %158 = vsyncpa [#allocation7], 1 }
 0x11e   :  { %159 = vsyncpa [#allocation5], 1 }

</bundles_post_ra>
